<compile_context>
chip_gen: v6e
topology: v6e:2x2x1
jax: 0.10.0
libtpu: 0.0.40
codegen_flags: <defaults>
</compile_context>

<pallas_src>
import functools

import jax
import jax.numpy as jnp
from jax.experimental import pallas as pl
from jax.experimental.pallas import tpu as pltpu


def _round_up(x, m):
    return ((x + m - 1) // m) * m


def _vmem_capacity_bytes():
    """Per-TensorCore VMEM capacity; conservative (v7x) fallback."""
    try:
        info = pltpu.get_tpu_info()
        cap = getattr(info, "vmem_capacity_bytes", None)
        if cap:
            return int(cap)
    except Exception:
        pass
    return 64 * 1024 * 1024


def _pick_c_chunk(C, R):
    """Largest divisor of C (<=32) keeping the per-chunk intermediate small."""
    for cc in (32, 16, 8, 4, 2, 1):
        if C % cc == 0 and (cc == 1 or cc * R <= 512):
            return cc
    return 1


def _pick_tile_p(HW, budget_bytes, fixed_bytes, per_pixel_bytes):
    """Largest 128-multiple output-pixel tile that fits the VMEM budget."""
    cap = _round_up(HW, 128)
    for t in (4096, 2048, 1024, 512, 256, 128):
        if t <= cap and fixed_bytes + t * per_pixel_bytes <= budget_bytes:
            return t
    return 128


def _spatial_transform_kernel(mov_ref, coord_ref, warped_ref, *,
                              C, K, R, CC, TILE_P, contract_w):
    # mov_ref:    (1, C*R, K)       moving image; rows = (channel, reduce-axis)
    # coord_ref:  (1, 2, TILE_P)    row 0 = pixel x (width), row 1 = pixel y
    # warped_ref: (1, C, TILE_P)
    f32 = jnp.float32

    coords = coord_ref[0]                       # one (2, P) load, slice in-reg
    ix = coords[0:1, :]                         # (1, P) pixel x
    iy = coords[1:2, :]                         # (1, P) pixel y

    # K-axis (MXU contraction) coordinate vs R-axis (VPU reduce) coordinate.
    if contract_w:
        ck, cr = ix, iy                         # K = W, R = H
    else:
        ck, cr = iy, ix                         # K = H, R = W

    k0f = jnp.floor(ck)
    fk = ck - k0f
    k0 = k0f.astype(jnp.int32)
    k1 = k0 + 1
    r0f = jnp.floor(cr)
    fr = cr - r0f
    r0 = r0f.astype(jnp.int32)
    r1 = r0 + 1

    # Separable one-hot bilinear weights; out-of-range indices never match the
    # iota => zero contribution == padding_mode='zeros'.
    kk = jax.lax.broadcasted_iota(jnp.int32, (K, TILE_P), 0)
    wk = (jnp.where(kk == k0, 1.0 - fk, 0.0) +
          jnp.where(kk == k1, fk, 0.0))                    # (K, P) f32
    rr = jax.lax.broadcasted_iota(jnp.int32, (R, TILE_P), 0)
    wr = (jnp.where(rr == r0, 1.0 - fr, 0.0) +
          jnp.where(rr == r1, fr, 0.0))                    # (R, P) f32

    mdt = mov_ref.dtype
    if mdt == jnp.bfloat16:
        # bf16 MXU path; weights rounded to bf16 (small documented tolerance).
        wk_mm = wk.astype(jnp.bfloat16)
        lhs_cast = lambda m: m
    elif jnp.issubdtype(mdt, jnp.floating):
        wk_mm = wk
        lhs_cast = lambda m: m
    else:
        # Integer moving images: promote to f32 so weights are not truncated.
        wk_mm = wk
        lhs_cast = lambda m: m.astype(f32)

    # Unrolled channel-chunk loop keeps the (CC*R, P) intermediate bounded.
    n_chunks = C // CC
    for c in range(n_chunks):
        mov_chunk = mov_ref[0, pl.ds(c * CC * R, CC * R), :]     # (CC*R, K)
        tmp = jax.lax.dot_general(
            lhs_cast(mov_chunk), wk_mm,
            dimension_numbers=(((1,), (0,)), ((), ())),
            preferred_element_type=f32,
        )                                                        # (CC*R, P)
        out = jnp.sum(tmp.reshape(CC, R, TILE_P) * wr[None, :, :], axis=1)
        warped_ref[0, pl.ds(c * CC, CC), :] = out.astype(warped_ref.dtype)


def spatial_transform(mov_image, flow):
    """Pallas equivalent of SpatialTransform.forward (mode='bilinear')."""
    B, C, H, W = mov_image.shape
    HW = H * W
    f32 = jnp.float32

    mov_dtype = mov_image.dtype
    out_dtype = mov_dtype if jnp.issubdtype(mov_dtype, jnp.floating) else f32
    mov_isz = jnp.dtype(mov_dtype).itemsize
    out_isz = jnp.dtype(out_dtype).itemsize

    # ---- wrapper-side sample_grid (base meshgrid folded into flow) ----------
    lin_h = jnp.linspace(-1.0, 1.0, H, dtype=f32)
    lin_w = jnp.linspace(-1.0, 1.0, W, dtype=f32)
    grid_h, grid_w = jnp.meshgrid(lin_h, lin_w, indexing="ij")   # (H, W)
    flow_f = flow.astype(f32)
    disp_h = grid_h[None] + flow_f[..., 0]                        # normalized y
    disp_w = grid_w[None] + flow_f[..., 1]                        # normalized x
    sample_grid = jnp.stack((disp_w, disp_h), axis=3)             # (B, H, W, 2)

    # normalized -> pixel coords (align_corners=True); exact 0 when H/W == 1.
    ix = (disp_w + 1.0) * ((W - 1) * 0.5)
    iy = (disp_h + 1.0) * ((H - 1) * 0.5)

    # ---- contraction-axis choice: MXU contracts the larger spatial axis -----
    contract_w = W >= H
    if contract_w:
        K, R = W, H
        mov2d = mov_image.reshape(B, C * H, W)                    # rows = (c, h)
    else:
        K, R = H, W
        mov2d = mov_image.transpose(0, 1, 3, 2).reshape(B, C * W, H)  # (c, w)

    CC = _pick_c_chunk(C, R)

    # ---- generation-aware VMEM budget / tile selection -----------------------
    vmem_cap = _vmem_capacity_bytes()
    vmem_limit = min(int(vmem_cap * 3) // 4, 100 * 1024 * 1024)   # ~48M v7x, ~96M v5e/v6e
    budget = vmem_limit // 2                                       # headroom for temps
    fixed_bytes = 2 * C * H * W * mov_isz                          # mov, double-buffered
    per_pixel_bytes = (2 * 2 * 4                                   # coords x2 bufs
                       + 2 * C * out_isz                           # warped x2 bufs
                       + (K + R) * 4                               # wk + wr
                       + CC * R * 4 + CC * 4)                      # chunk tmp + out
    TILE_P = _pick_tile_p(HW, budget, fixed_bytes, per_pixel_bytes)

    HW_pad = _round_up(HW, TILE_P)
    num_tiles = HW_pad // TILE_P

    # planar, lane-dense pixel coordinates (row 0 = x, row 1 = y)
    coords = jnp.stack([ix.reshape(B, HW), iy.reshape(B, HW)], axis=1)  # (B,2,HW)
    if HW_pad != HW:
        coords = jnp.pad(coords, ((0, 0), (0, 0), (0, HW_pad - HW)))

    kernel = functools.partial(_spatial_transform_kernel,
                               C=C, K=K, R=R, CC=CC, TILE_P=TILE_P,
                               contract_w=contract_w)

    flops = 2 * B * C * H * W * HW_pad + 2 * B * C * R * HW_pad
    bytes_accessed = (B * C * H * W * mov_isz
                      + B * 2 * HW_pad * 4
                      + B * C * HW_pad * out_isz)

    warped_flat = pl.pallas_call(
        kernel,
        out_shape=jax.ShapeDtypeStruct((B, C, HW_pad), out_dtype),
        grid=(B, num_tiles),
        in_specs=[
            pl.BlockSpec((1, C * R, K), lambda b, t: (b, 0, 0)),   # resident over t
            pl.BlockSpec((1, 2, TILE_P), lambda b, t: (b, 0, t)),
        ],
        out_specs=pl.BlockSpec((1, C, TILE_P), lambda b, t: (b, 0, t)),
        compiler_params=pltpu.CompilerParams(
            dimension_semantics=("parallel", "parallel"),
            vmem_limit_bytes=vmem_limit,
        ),
        cost_estimate=pl.CostEstimate(
            flops=int(flops), transcendentals=0,
            bytes_accessed=int(bytes_accessed)),
    )(mov2d, coords)

    warped = warped_flat[:, :, :HW].reshape(B, C, H, W)
    return sample_grid, warped


# ----------------------------- pure-JAX reference -----------------------------
def _ref_spatial_transform(mov, flow):
    B, C, H, W = mov.shape
    lin_h = jnp.linspace(-1.0, 1.0, H, dtype=jnp.float32)
    lin_w = jnp.linspace(-1.0, 1.0, W, dtype=jnp.float32)
    grid_h, grid_w = jnp.meshgrid(lin_h, lin_w, indexing="ij")
    disp_h = grid_h[None] + flow[..., 0]
    disp_w = grid_w[None] + flow[..., 1]
    sample_grid = jnp.stack((disp_w, disp_h), axis=3)          # (B, H, W, 2)

    x = (sample_grid[..., 0] + 1.0) * 0.5 * (W - 1)
    y = (sample_grid[..., 1] + 1.0) * 0.5 * (H - 1)
    x0 = jnp.floor(x).astype(jnp.int32)
    y0 = jnp.floor(y).astype(jnp.int32)
    x1 = x0 + 1
    y1 = y0 + 1
    fx = x - x0
    fy = y - y0

    def gather(yy, xx):
        valid = (yy >= 0) & (yy < H) & (xx >= 0) & (xx < W)
        yc = jnp.clip(yy, 0, H - 1)
        xc = jnp.clip(xx, 0, W - 1)
        v = jax.vmap(lambda m, yb, xb: m[:, yb, xb])(mov, yc, xc)
        return v * valid[:, None, :, :].astype(mov.dtype)

    w00 = ((1 - fy) * (1 - fx))[:, None]
    w01 = ((1 - fy) * fx)[:, None]
    w10 = (fy * (1 - fx))[:, None]
    w11 = (fy * fx)[:, None]
    warped = (gather(y0, x0) * w00 + gather(y0, x1) * w01 +
              gather(y1, x0) * w10 + gather(y1, x1) * w11)
    return sample_grid, warped


if __name__ == "__main__":
    B, C, H, W = 2, 4, 16, 16
    key = jax.random.PRNGKey(0)
    k1, k2 = jax.random.split(key)
    mov_image = jax.random.normal(k1, (B, C, H, W), dtype=jnp.float32)
    flow = 0.25 * jax.random.normal(k2, (B, H, W, 2), dtype=jnp.float32)

    sample_grid, warped = jax.jit(spatial_transform)(mov_image, flow)
    jax.block_until_ready((sample_grid, warped))

    sg_ref, warped_ref = _ref_spatial_transform(mov_image, flow)
    assert sample_grid.shape == (B, H, W, 2)
    assert warped.shape == (B, C, H, W)
    assert jnp.allclose(sample_grid, sg_ref, atol=1e-5, rtol=1e-5)
    assert jnp.allclose(warped, warped_ref, atol=1e-4, rtol=1e-4)

    print("KERNEL_OK")
</pallas_src>

<mosaic_0001>
module attributes {stable_mosaic.version = 11 : i64} {
  func.func @_spatial_transform_kernel(%arg0: i32, %arg1: i32, %arg2: memref<1x64x16xf32, #tpu.memory_space<vmem>>, %arg3: memref<1x2x256xf32, #tpu.memory_space<vmem>>, %arg4: memref<1x4x256xf32, #tpu.memory_space<vmem>>) attributes {dimension_semantics = [#tpu.dimension_semantics<parallel>, #tpu.dimension_semantics<parallel>], iteration_bounds = array<i64: 2, 1>, scalar_prefetch = 0 : i64, scratch_operands = 0 : i64, tpu.core_type = #tpu.core_type<tc>, window_params = [{transform_indices = @transform_0, window_bounds = array<i64: 1, 64, 16>}, {transform_indices = @transform_1, window_bounds = array<i64: 1, 2, 256>}, {transform_indices = @transform_2, window_bounds = array<i64: 1, 4, 256>}]} {
    %c0 = arith.constant 0 : index
    %c0_0 = arith.constant 0 : index
    %c0_1 = arith.constant 0 : index
    %0 = vector.load %arg3[%c0, %c0_0, %c0_1] : memref<1x2x256xf32, #tpu.memory_space<vmem>>, vector<1x2x256xf32>
    %1 = vector.shape_cast %0 : vector<1x2x256xf32> to vector<2x256xf32>
    %2 = vector.extract_strided_slice %1 {offsets = [0, 0], sizes = [1, 256], strides = [1, 1]} : vector<2x256xf32> to vector<1x256xf32>
    %3 = vector.extract_strided_slice %1 {offsets = [1, 0], sizes = [1, 256], strides = [1, 1]} : vector<2x256xf32> to vector<1x256xf32>
    %4 = math.floor %2 : vector<1x256xf32>
    %5 = arith.subf %2, %4 : vector<1x256xf32>
    %6 = arith.fptosi %4 : vector<1x256xf32> to vector<1x256xi32>
    %c1_i32 = arith.constant 1 : i32
    %7 = vector.broadcast %c1_i32 : i32 to vector<1x256xi32>
    %8 = arith.addi %6, %7 : vector<1x256xi32>
    %9 = math.floor %3 : vector<1x256xf32>
    %10 = arith.subf %3, %9 : vector<1x256xf32>
    %11 = arith.fptosi %9 : vector<1x256xf32> to vector<1x256xi32>
    %c1_i32_2 = arith.constant 1 : i32
    %12 = vector.broadcast %c1_i32_2 : i32 to vector<1x256xi32>
    %13 = arith.addi %11, %12 : vector<1x256xi32>
    %14 = tpu.iota {dimensions = array<i32: 0>} : vector<16x256xi32>
    %15 = vector.broadcast %6 : vector<1x256xi32> to vector<16x256xi32>
    %16 = arith.cmpi eq, %14, %15 : vector<16x256xi32>
    %cst = arith.constant 1.000000e+00 : f32
    %17 = vector.broadcast %cst : f32 to vector<1x256xf32>
    %18 = arith.subf %17, %5 : vector<1x256xf32>
    %cst_3 = arith.constant 0.000000e+00 : f32
    %19 = vector.shape_cast %18 : vector<1x256xf32> to vector<1x256xf32>
    %20 = vector.broadcast %19 : vector<1x256xf32> to vector<16x256xf32>
    %21 = vector.broadcast %cst_3 : f32 to vector<16x256xf32>
    %22 = arith.select %16, %20, %21 : vector<16x256xi1>, vector<16x256xf32>
    %23 = vector.broadcast %8 : vector<1x256xi32> to vector<16x256xi32>
    %24 = arith.cmpi eq, %14, %23 : vector<16x256xi32>
    %cst_4 = arith.constant 0.000000e+00 : f32
    %25 = vector.shape_cast %5 : vector<1x256xf32> to vector<1x256xf32>
    %26 = vector.broadcast %25 : vector<1x256xf32> to vector<16x256xf32>
    %27 = vector.broadcast %cst_4 : f32 to vector<16x256xf32>
    %28 = arith.select %24, %26, %27 : vector<16x256xi1>, vector<16x256xf32>
    %29 = arith.addf %22, %28 : vector<16x256xf32>
    %30 = tpu.iota {dimensions = array<i32: 0>} : vector<16x256xi32>
    %31 = vector.broadcast %11 : vector<1x256xi32> to vector<16x256xi32>
    %32 = arith.cmpi eq, %30, %31 : vector<16x256xi32>
    %cst_5 = arith.constant 1.000000e+00 : f32
    %33 = vector.broadcast %cst_5 : f32 to vector<1x256xf32>
    %34 = arith.subf %33, %10 : vector<1x256xf32>
    %cst_6 = arith.constant 0.000000e+00 : f32
    %35 = vector.shape_cast %34 : vector<1x256xf32> to vector<1x256xf32>
    %36 = vector.broadcast %35 : vector<1x256xf32> to vector<16x256xf32>
    %37 = vector.broadcast %cst_6 : f32 to vector<16x256xf32>
    %38 = arith.select %32, %36, %37 : vector<16x256xi1>, vector<16x256xf32>
    %39 = vector.broadcast %13 : vector<1x256xi32> to vector<16x256xi32>
    %40 = arith.cmpi eq, %30, %39 : vector<16x256xi32>
    %cst_7 = arith.constant 0.000000e+00 : f32
    %41 = vector.shape_cast %10 : vector<1x256xf32> to vector<1x256xf32>
    %42 = vector.broadcast %41 : vector<1x256xf32> to vector<16x256xf32>
    %43 = vector.broadcast %cst_7 : f32 to vector<16x256xf32>
    %44 = arith.select %40, %42, %43 : vector<16x256xi1>, vector<16x256xf32>
    %45 = arith.addf %38, %44 : vector<16x256xf32>
    %c0_8 = arith.constant 0 : index
    %c0_9 = arith.constant 0 : index
    %c0_10 = arith.constant 0 : index
    %46 = vector.load %arg2[%c0_8, %c0_9, %c0_10] : memref<1x64x16xf32, #tpu.memory_space<vmem>>, vector<1x64x16xf32>
    %47 = vector.shape_cast %46 : vector<1x64x16xf32> to vector<64x16xf32>
    %cst_11 = arith.constant dense<0.000000e+00> : vector<64x256xf32>
    %48 = tpu.matmul %47, %29, %cst_11 {dimension_numbers = #tpu.dot_dimension_numbers<[1], [0], [0], [1], [0, 0, 1, 1], [], []>} : vector<64x16xf32>, vector<16x256xf32>, vector<64x256xf32> -> vector<64x256xf32>
    %49 = vector.shape_cast %48 : vector<64x256xf32> to vector<4x16x256xf32>
    %50 = vector.shape_cast %45 : vector<16x256xf32> to vector<1x16x256xf32>
    %51 = vector.broadcast %50 : vector<1x16x256xf32> to vector<4x16x256xf32>
    %52 = arith.mulf %49, %51 : vector<4x16x256xf32>
    %cst_12 = arith.constant dense<0.000000e+00> : vector<4x256xf32>
    %53 = vector.multi_reduction <add>, %52, %cst_12 [1] : vector<4x16x256xf32> to vector<4x256xf32>
    %c0_13 = arith.constant 0 : index
    %c0_14 = arith.constant 0 : index
    %c0_15 = arith.constant 0 : index
    %54 = vector.load %arg4[%c0_13, %c0_14, %c0_15] : memref<1x4x256xf32, #tpu.memory_space<vmem>>, vector<1x4x256xf32>
    %55 = vector.shape_cast %54 : vector<1x4x256xf32> to vector<4x256xf32>
    %56 = vector.shape_cast %53 : vector<4x256xf32> to vector<1x4x256xf32>
    tpu.vector_store %arg4[%c0_13, %c0_14, %c0_15], %56 {strides = array<i32>} : memref<1x4x256xf32, #tpu.memory_space<vmem>>, vector<1x4x256xf32>,
    return
  }
  func.func @transform_0(%arg0: i32, %arg1: i32) -> (i32, i32, i32) {
    %c0_i32 = arith.constant 0 : i32
    %c0_i32_0 = arith.constant 0 : i32
    %c0_i32_1 = arith.constant 0 : i32
    return %arg0, %c0_i32, %c0_i32_0 : i32, i32, i32
  }
  func.func @transform_1(%arg0: i32, %arg1: i32) -> (i32, i32, i32) {
    %c0_i32 = arith.constant 0 : i32
    %c0_i32_0 = arith.constant 0 : i32
    return %arg0, %c0_i32, %arg1 : i32, i32, i32
  }
  func.func @transform_2(%arg0: i32, %arg1: i32) -> (i32, i32, i32) {
    %c0_i32 = arith.constant 0 : i32
    %c0_i32_0 = arith.constant 0 : i32
    return %arg0, %c0_i32, %arg1 : i32, i32, i32
  }
}

</mosaic_0001>

<bundles_post_ra>
// kernel: spatial_transform.1
= control target key start
LH: loop header
LB: loop body
LE: loop exit
PB: predicated region body
PF: predicated region fallthrough
CT: control target
= control target key end

     0   :  { %s831_s9 = smov 0   ;;  %s833_s10 = smov 0   ;;  %s949_s0 = inlined_call_operand.vmem [shape: f32[2,64,16], index: 0, kind: input, shape index: {}]   ;;  %s950_s1 = inlined_call_operand.vmem [shape: f32[2,2,256], index: 1, kind: input, shape index: {}]   ;;  %s951_s2 = inlined_call_operand.vmem [shape: f32[2,4,256], index: 2, kind: output, shape index: {}]  }
   0x1   :  { %s835_s11 = smov 0  }
   0x2 LB: > { %s24_s12 = sadd.s32 1, %s809_s10  ;;  %p740_p0 = scmp.ge.s32.totalorder %s813_s11, 1  ;;  %s813_s11 = sphi %s835_s11, %s12_s11   ;;  %s809_s10 = sphi %s833_s10, %s953_s10   ;;  %s805_s9 = sphi %s831_s9, %s952_s9  }
   0x3   : > { %p26_p1 = scmp.ge.s32.totalorder %s24_s12, 2  ;;  %p143_p2 = scmp.lt.s32.totalorder %s813_s11, 3 }
   0x5   : > { %s955_s12 = smov (%p26_p1, %s24_s12), 0  ;;  %p144_p3 = pnand %p740_p0, %p143_p2 }
   0x6   : > { %p178_p4 = scmp.lt.s32.totalorder (!%p144_p3), %s805_s9, 1 }
   0x7   : > { %147 = sbr.rel (%p144_p3) target bundleno = 270 (0x10e), region = 28 }
   0xc   : > { %v208_v0 = vlaneseq  ;;  %v815_v1 = vmov 0.0   ;;  %s957_s9 = smov (!%p178_p4, %s805_s9), 1  ;;  %vm398_vm8 = vcmask 130048  }
   0xd   : > { %487 = vmatprep.mubr.f32.mxu0 %v815_v1  ;;  %511 = vmatprep.mubr.f32.mxu1 %v815_v1  ;;  %s758_s13 = sshll.u32 %s957_s9, 2  ;;  %s757_s17 = sshll.u32 %s957_s9, 6 }
   0xe   : > { %v854_v2 = vshrl.u32 %v208_v0, 7  ;;  %s191_s16 = scalar_lea.vmem %s950_s1, %s758_s13  ;;  %s894_s20 = scalar_lea.vmem %s949_s0, %s757_s17 }
   0xf   : > { %v203_v3 = vld [vmem:[%s191_s16] sm:$0xf]  ;;  %v391_v43 = vld [vmem:[%s894_s20 + $0x8] sm:$0xff]  ;;  %v392_v45 = vld [vmem:[%s894_s20 + $0x10] sm:$0xff]  ;;  %s759_s21 = sshll.u32 %s957_s9, 3 }
  0x10   : > { %v204_v4 = vfloor.f32 %v203_v3  ;;  %v213_v5 = vsub.s32 0, %v854_v2  ;;  %v217_v6 = vsub.s32 2, %v854_v2  ;;  %v874_v14 = vadd.s32 8, %v854_v2  ;;  %v390_v41 = vld [vmem:[%s894_s20] sm:$0xff]  ;;  %v395_v44 = vld [vmem:[%s894_s20 + $0x28] sm:$0xff]  ;;  %v396_v46 = vld [vmem:[%s894_s20 + $0x30] sm:$0xff]  ;;  %s201_s24 = scalar_lea.vmem %s951_s2, %s759_s21 }
  0x11   : > { %v394_v42 = vld [vmem:[%s894_s20 + $0x20] sm:$0xff]  ;;  %v393_v47 = vld [vmem:[%s894_s20 + $0x18] sm:$0xff]  ;;  %v304_v49 = vsub.s32 1, %v854_v2  ;;  %v308_v50 = vsub.s32 3, %v854_v2 }
  0x12   : > { %v861_v7 = vsub.f32 %v203_v3, %v204_v4  ;;  %v764_v8 = vtrunc.f32 %v204_v4  ;;  %v397_v48 = vld [vmem:[%s894_s20 + $0x38] sm:$0xff] }
  0x14   : > { %v863_v9 = vcvt.f32.s32 %v764_v8  ;;  %v866_v10 = vsub.f32 1.0, %v861_v7  ;;  %v283_v11 = vrot.slane %v861_v7, %v217_v6  ;;  %v279_v12 = vrot.slane %v861_v7, %v213_v5 }
  0x15   : > { %v367_v58 = vrot.slane %v861_v7, %v304_v49  ;;  %v371_v60 = vrot.slane %v861_v7, %v308_v50 }
  0x16   : > { %v871_v13 = vadd.s32 1, %v863_v9  ;;  %v218_v15 = vrot.slane %v863_v9, %v217_v6  ;;  %v240_v16 = vrot.slane %v866_v10, %v217_v6  ;;  %v214_v17 = vrot.slane %v863_v9, %v213_v5 }
  0x17   : > { %v236_v18 = vrot.slane %v866_v10, %v213_v5  ;;  %v293_v23 = vrot.slane %v283_v11, %v213_v5  ;;  %v289_v26 = vrot.slane %v279_v12, %v213_v5  ;;  %v305_v51 = vrot.slane %v863_v9, %v304_v49 }
  0x18   : > { %v226_v19 = vrot.slane %v218_v15, %v213_v5  ;;  %v250_v20 = vrot.slane %v240_v16, %v213_v5  ;;  %v262_v21 = vrot.slane %v871_v13, %v217_v6  ;;  %v258_v22 = vrot.slane %v871_v13, %v213_v5 }
  0x19   : > { %v222_v24 = vrot.slane %v214_v17, %v213_v5  ;;  %v246_v25 = vrot.slane %v236_v18, %v213_v5  ;;  %v347_v52 = vrot.slane %v871_v13, %v304_v49  ;;  %v309_v53 = vrot.slane %v863_v9, %v308_v50 }
  0x1a   : > { %vm230_vm0 = vcmp.eq.s32.totalorder %v874_v14, %v226_v19  ;;  %v270_v27 = vrot.slane %v262_v21, %v213_v5  ;;  %v266_v28 = vrot.slane %v258_v22, %v213_v5  ;;  %vm228_vm1 = vcmp.eq.s32.totalorder %v854_v2, %v226_v19 }
  0x1b   : > { %v254_v29 = vsel %vm230_vm0, %v250_v20, 0.0  ;;  %vm229_vm2 = vcmp.eq.s32.totalorder %v874_v14, %v222_v24  ;;  %v252_v30 = vsel %vm228_vm1, %v250_v20, 0.0  ;;  %vm227_vm3 = vcmp.eq.s32.totalorder %v854_v2, %v222_v24 }
  0x1c   : > { %vm274_vm4 = vcmp.eq.s32.totalorder %v874_v14, %v270_v27  ;;  %v253_v31 = vsel %vm229_vm2, %v246_v25, 0.0  ;;  %vm273_vm5 = vcmp.eq.s32.totalorder %v874_v14, %v266_v28  ;;  %vm272_vm6 = vcmp.eq.s32.totalorder %v854_v2, %v270_v27 }
  0x1d   : > { %v297_v32 = vsel %vm274_vm4, %v293_v23, 0.0  ;;  %v296_v33 = vsel %vm273_vm5, %v289_v26, 0.0  ;;  %v295_v34 = vsel %vm272_vm6, %v293_v23, 0.0  ;;  %v251_v35 = vsel %vm227_vm3, %v246_v25, 0.0 }
  0x1e   : > { %v301_v36 = vadd.f32 %v297_v32, %v254_v29  ;;  %v300_v37 = vadd.f32 %v296_v33, %v253_v31  ;;  %v299_v38 = vadd.f32 %v295_v34, %v252_v30  ;;  %vm271_vm7 = vcmp.eq.s32.totalorder %v854_v2, %v266_v28 }
  0x1f   : > { %v294_v39 = vsel %vm271_vm7, %v289_v26, 0.0  ;;  %v351_v54 = vrot.slane %v871_v13, %v308_v50  ;;  %v313_v55 = vrot.slane %v305_v51, %v304_v49  ;;  %v325_v56 = vrot.slane %v866_v10, %v304_v49 }
  0x20   : > { %451 = vmatprep.subr.mxu0 %v301_v36  ;;  %760 = vmatprep.subr.mxu1 %v301_v36  ;;  %v298_v40 = vadd.f32 %v294_v39, %v251_v35  ;;  %v355_v57 = vrot.slane %v347_v52, %v304_v49  ;;  %v329_v59 = vrot.slane %v866_v10, %v308_v50  ;;  %vm621_vm1 = vcmask 1041409  }
  0x21   : > { %452 = vmatpush1.msra.mxu0 %v300_v37  ;;  %762 = vmatpush1.msra.mxu1 %v300_v37  ;;  %v317_v61 = vrot.slane %v309_v53, %v304_v49  ;;  %v359_v62 = vrot.slane %v351_v54, %v304_v49  ;;  %vm318_vm9 = vcmp.eq.s32.totalorder %v854_v2, %v313_v55  ;;  %vm623_vm2 = vcmask 1045509  }
  0x22   : > { %453 = vmatprep.subr.mxu0 %v299_v38  ;;  %761 = vmatprep.subr.mxu1 %v299_v38  ;;  %v335_v63 = vrot.slane %v325_v56, %v304_v49  ;;  %vm360_vm10 = vcmp.eq.s32.totalorder %v854_v2, %v355_v57  ;;  %v377_v0 = vrot.slane %v367_v58, %v304_v49  ;;  %vm626_vm3 = vcmask 1042434  }
  0x23   : > { %454 = vmatpush1.msra.mxu0 %v298_v40  ;;  %763 = vmatpush1.msra.mxu1 %v298_v40  ;;  %v381_v3 = vrot.slane %v371_v60, %v304_v49  ;;  %vm320_vm11 = vcmp.eq.s32.totalorder %v874_v14, %v313_v55  ;;  %vm362_vm12 = vcmp.eq.s32.totalorder %v874_v14, %v355_v57  ;;  %vm628_vm4 = vcmask 1046534  }
  0x24   : > { %747 = vmatmul.mubr.msk.f32.vlgmr.msra.gmra.mxu0 %vm398_vm8, %v390_v41  ;;  %751 = vmatmul.mubr.msk.f32.vlgmr.msra.gmra.mxu1 %vm398_vm8, %v394_v42  ;;  %vm319_vm13 = vcmp.eq.s32.totalorder %v854_v2, %v317_v61  ;;  %vm361_vm14 = vcmp.eq.s32.totalorder %v854_v2, %v359_v62  ;;  %vm321_vm15 = vcmp.eq.s32.totalorder %v874_v14, %v317_v61  ;;  %v340_v4 = vsel %vm318_vm9, %v335_v63, 0.0 }
  0x25   : > { %493 = vmatprep.mubr.f32.mxu0 %v815_v1  ;;  %517 = vmatprep.mubr.f32.mxu1 %v815_v1  ;;  %vm363_vm0 = vcmp.eq.s32.totalorder %v874_v14, %v359_v62  ;;  %v382_v5 = vsel %vm360_vm10, %v377_v0, 0.0  ;;  %v342_v6 = vsel %vm320_vm11, %v335_v63, 0.0  ;;  %v384_v7 = vsel %vm362_vm12, %v377_v0, 0.0 }
  0x26   : > { %v383_v9 = vsel %vm361_vm14, %v381_v3, 0.0  ;;  %v385_v13 = vsel %vm363_vm0, %v381_v3, 0.0  ;;  %v386_v15 = vadd.f32 %v382_v5, %v340_v4  ;;  %v388_v16 = vadd.f32 %v384_v7, %v342_v6 }
  0x27   : > { %vm631_vm5 = vcmask 1043459   ;;  %vm633_vm6 = vcmask 1047559  }
  0x28   : > { %748 = vmatmul.mubr.msk.f32.gmra.mxu0 %vm398_vm8, %v391_v43  ;;  %752 = vmatmul.mubr.msk.f32.gmra.mxu1 %vm398_vm8, %v395_v44 }
  0x29   : > { %499 = vmatprep.mubr.f32.mxu0 %v815_v1  ;;  %523 = vmatprep.mubr.f32.mxu1 %v815_v1 }
  0x2c   : > { %749 = vmatmul.mubr.msk.f32.gmra.mxu0 %vm398_vm8, %v392_v45  ;;  %753 = vmatmul.mubr.msk.f32.gmra.mxu1 %vm398_vm8, %v396_v46 }
  0x2d   : > { %505 = vmatprep.mubr.f32.mxu0 %v815_v1  ;;  %529 = vmatprep.mubr.f32.mxu1 %v815_v1  ;;  %v339_v1 = vrot.slane %v329_v59, %v304_v49 }
  0x2f   : > { %v341_v8 = vsel %vm319_vm13, %v339_v1, 0.0  ;;  %v343_v12 = vsel %vm321_vm15, %v339_v1, 0.0 }
  0x30   : > { %750 = vmatmul.mubr.msk.f32.gmra.mxu0 %vm398_vm8, %v393_v47  ;;  %754 = vmatmul.mubr.msk.f32.gmra.mxu1 %vm398_vm8, %v397_v48  ;;  %v387_v17 = vadd.f32 %v383_v9, %v341_v8  ;;  %v389_v20 = vadd.f32 %v385_v13, %v343_v12 }
  0xe4   : > { %v489_v10 = vpop.f32.mrf.mxu0  ;;  %v513_v11 = vpop.f32.mrf.mxu1 }
  0xe5   : > { %v544_v2 = vmul.f32 %v513_v11, %v386_v15  ;;  %v536_v14 = vmul.f32 %v489_v10, %v386_v15 }
  0xe6   : > { %v491_v18 = vpop.f32.mrf.mxu0  ;;  %v515_v19 = vpop.f32.mrf.mxu1 }
  0xe7   : > { %v537_v25 = vmul.f32 %v491_v18, %v387_v17  ;;  %v545_v26 = vmul.f32 %v515_v19, %v387_v17 }
  0xe8   : > { %v495_v21 = vpop.f32.mrf.mxu0  ;;  %v519_v22 = vpop.f32.mrf.mxu1 }
  0xe9   : > { %v538_v23 = vmul.f32 %v495_v21, %v388_v16  ;;  %v546_v24 = vmul.f32 %v519_v22, %v388_v16 }
  0xea   : > { %v497_v27 = vpop.f32.mrf.mxu0  ;;  %v521_v28 = vpop.f32.mrf.mxu1 }
  0xeb   : > { %v552_v29 = vadd.f32 %v538_v23, %v536_v14  ;;  %v580_v30 = vadd.f32 %v546_v24, %v544_v2  ;;  %v539_v31 = vmul.f32 %v497_v27, %v389_v20  ;;  %v547_v32 = vmul.f32 %v521_v28, %v389_v20 }
  0xec   : > { %v501_v33 = vpop.f32.mrf.mxu0  ;;  %v525_v34 = vpop.f32.mrf.mxu1 }
  0xed   : > { %v581_v35 = vrot.slane %v580_v30, 4  ;;  %v559_v36 = vadd.f32 %v539_v31, %v537_v25  ;;  %v587_v37 = vadd.f32 %v547_v32, %v545_v26  ;;  %v553_v40 = vrot.slane %v552_v29, 4 }
  0xee   : > { %v503_v38 = vpop.f32.mrf.mxu0  ;;  %v527_v39 = vpop.f32.mrf.mxu1  ;;  %v548_v43 = vmul.f32 %v525_v34, %v386_v15  ;;  %v540_v49 = vmul.f32 %v501_v33, %v386_v15 }
  0xef   : > { %v560_v41 = vrot.slane %v559_v36, 4  ;;  %v588_v42 = vrot.slane %v587_v37, 4  ;;  %v582_v46 = vadd.f32 %v581_v35, %v580_v30  ;;  %v554_v54 = vadd.f32 %v553_v40, %v552_v29 }
  0xf0   : > { %v507_v44 = vpop.f32.mrf.mxu0  ;;  %v531_v45 = vpop.f32.mrf.mxu1  ;;  %v541_v56 = vmul.f32 %v503_v38, %v387_v17  ;;  %v549_v57 = vmul.f32 %v527_v39, %v387_v17 }
  0xf1   : > { %v561_v47 = vadd.f32 %v560_v41, %v559_v36  ;;  %v589_v48 = vadd.f32 %v588_v42, %v587_v37  ;;  %v542_v50 = vmul.f32 %v507_v44, %v388_v16  ;;  %v550_v51 = vmul.f32 %v531_v45, %v388_v16 }
  0xf2   : > { %v509_v52 = vpop.f32.mrf.mxu0  ;;  %v533_v53 = vpop.f32.mrf.mxu1  ;;  %v583_v62 = vrot.slane %v582_v46, 2  ;;  %v555_v5 = vrot.slane %v554_v54, 2 }
  0xf3   : > { %v590_v55 = vrot.slane %v589_v48, 2  ;;  %v566_v58 = vadd.f32 %v542_v50, %v540_v49  ;;  %v594_v59 = vadd.f32 %v550_v51, %v548_v43  ;;  %v543_v60 = vmul.f32 %v509_v52, %v389_v20 }
  0xf4   : > { %v551_v61 = vmul.f32 %v533_v53, %v389_v20  ;;  %v562_v63 = vrot.slane %v561_v47, 2  ;;  %v584_v11 = vadd.f32 %v583_v62, %v582_v46  ;;  %v556_v18 = vadd.f32 %v555_v5, %v554_v54 }
  0xf5   : > { %v567_v0 = vrot.slane %v566_v58, 4  ;;  %v595_v1 = vrot.slane %v594_v59, 4  ;;  %v573_v3 = vadd.f32 %v543_v60, %v541_v56  ;;  %v591_v6 = vadd.f32 %v590_v55, %v589_v48 }
  0xf6   : > { %v601_v4 = vadd.f32 %v551_v61, %v549_v57  ;;  %v563_v12 = vadd.f32 %v562_v63, %v561_v47  ;;  %v585_v14 = vrot.slane %v584_v11, 1  ;;  %v557_v27 = vrot.slane %v556_v18, 1 }
  0xf7   : > { %v568_v7 = vadd.f32 %v567_v0, %v566_v58  ;;  %v596_v8 = vadd.f32 %v595_v1, %v594_v59  ;;  %v574_v9 = vrot.slane %v573_v3, 4  ;;  %v592_v19 = vrot.slane %v591_v6, 1 }
  0xf8   : > { %v602_v10 = vrot.slane %v601_v4, 4  ;;  %v564_v23 = vrot.slane %v563_v12, 1  ;;  %v586_v32 = vadd.f32 %v585_v14, %v584_v11  ;;  %v558_v37 = vadd.f32 %v557_v27, %v556_v18 }
  0xf9   : > { %v569_v13 = vrot.slane %v568_v7, 2  ;;  %v597_v15 = vrot.slane %v596_v8, 2  ;;  %v575_v16 = vadd.f32 %v574_v9, %v573_v3  ;;  %v593_v28 = vadd.f32 %v592_v19, %v591_v6 }
  0xfa   : > { %v603_v17 = vadd.f32 %v602_v10, %v601_v4  ;;  %v565_v33 = vadd.f32 %v564_v23, %v563_v12 }
  0xfb   : > { %v570_v2 = vadd.f32 %v569_v13, %v568_v7  ;;  %v598_v20 = vadd.f32 %v597_v15, %v596_v8  ;;  %v576_v21 = vrot.slane %v575_v16, 2  ;;  %v618_v38 = vcombine.low %v586_v32, %v593_v28 }
  0xfc   : > { %v604_v22 = vrot.slane %v603_v17, 2  ;;  %v616_v41 = vcombine.low %v558_v37, %v565_v33 }
  0xfd   : > { %v571_v24 = vrot.slane %v570_v2, 1  ;;  %v577_v25 = vadd.f32 %v576_v21, %v575_v16  ;;  %v599_v29 = vrot.slane %v598_v20, 1  ;;  %v625_v44 = vrot.slane %v618_v38, 6 }
  0xfe   : > { %v605_v26 = vadd.f32 %v604_v22, %v603_v17 }
  0xff   : > { %v578_v30 = vrot.slane %v577_v25, 1  ;;  %v572_v34 = vadd.f32 %v571_v24, %v570_v2  ;;  %v600_v39 = vadd.f32 %v599_v29, %v598_v20 }
 0x100   : > { %v606_v31 = vrot.slane %v605_v26, 1 }
 0x101   : > { %v579_v35 = vadd.f32 %v578_v30, %v577_v25 }
 0x102   : > { %v607_v36 = vadd.f32 %v606_v31, %v605_v26 }
 0x103   : > { %v617_v40 = vcombine.low %v572_v34, %v579_v35 }
 0x104   : > { %v619_v43 = vcombine.low %v600_v39, %v607_v36 }
 0x105   : > { %v620_v42 = vrot.slane %v617_v40, 7 }
 0x106   : > { %v630_v48 = vrot.slane %v619_v43, 5 }
 0x107   : > { %v622_v45 = vsel %vm621_vm1, %v620_v42, %v616_v41 }
 0x108   : > { %v624_v46 = vsel %vm623_vm2, %v620_v42, %v622_v45 }
 0x109   : > { %v627_v47 = vsel %vm626_vm3, %v625_v44, %v624_v46 }
 0x10a   : > { %v629_v49 = vsel %vm628_vm4, %v625_v44, %v627_v47 }
 0x10b   : > { %v632_v50 = vsel %vm631_vm5, %v630_v48, %v629_v49 }
 0x10c   : > { %v634_v51 = vsel %vm633_vm6, %v630_v48, %v632_v50 }
 0x10d   : > { %636 = vst [vmem:[%s201_s24] sm:$0xff] %v634_v51 }
 0x10e PF: > { %s12_s11 = sadd.s32 1, %s813_s11   ;;  %s952_s9 = smov %s809_s10 }
 0x10f   : > { %p9_p5 = scmp.ge.s32.totalorder %s12_s11, 4   ;;  %s953_s10 = smov %s955_s12 }
 0x111   :  { %11 = sbr.rel (!%p9_p5) target bundleno = 2 (0x2), region = 61 }

</bundles_post_ra>
